<compile_context>
chip_gen: v6e
topology: v6e:2x2x1
jax: 0.10.0
libtpu: 0.0.40
codegen_flags: <defaults>
</compile_context>

<pallas_src>
import functools

import jax
import jax.numpy as jnp
import numpy as np
from jax.experimental import pallas as pl
from jax.experimental.pallas import tpu as pltpu

# dot_general dimension numbers for A @ B.T (contract last dim of both operands)
_NT_DIMS = (((1,), (1,)), ((), ()))


# ----------------------------- Conv2d kernel ------------------------------ #
def _conv_kernel(x_ref, w_ref, b_ref, o_ref, *, N, OH, OW, KH, KW):
    """Valid conv, whole batch in one grid step, NCHW-ordered output.

    x_ref: (N, H, W, Cin)        NHWC input (channels on the lane dim)
    w_ref: (KH, KW, Cout, Cin)   weights
    b_ref: (Cout, 1)             bias
    o_ref: (N, Cout, OH*OW)      NCHW output with flattened spatial dims
    """
    cin = x_ref.shape[-1]
    cout = o_ref.shape[1]
    bias = b_ref[...]                                          # (Cout, 1), loaded once
    for n in range(N):                                         # tiny static batch
        acc = jnp.zeros((cout, OH * OW), jnp.float32)
        for kh in range(KH):                                   # 3x3 -> 9 matmuls/image
            for kw in range(KW):
                # Shifted window flattened over (OH, OW): (OH*OW, Cin).
                xs = x_ref[n, kh:kh + OH, kw:kw + OW, :].reshape(OH * OW, cin)
                wk = w_ref[kh, kw]                             # (Cout, Cin)
                acc = acc + jax.lax.dot_general(
                    wk, xs, _NT_DIMS, preferred_element_type=jnp.float32)
        o_ref[n] = acc + bias                                  # bias broadcast once


def conv2d_valid(x_nhwc, w_hwoi, bias):
    N, H, W, Cin = x_nhwc.shape
    KH, KW, Cout, _ = w_hwoi.shape
    OH, OW = H - KH + 1, W - KW + 1
    kernel = functools.partial(_conv_kernel, N=N, OH=OH, OW=OW, KH=KH, KW=KW)
    y = pl.pallas_call(
        kernel,
        out_shape=jax.ShapeDtypeStruct((N, Cout, OH * OW), jnp.float32),
        grid=(1,),  # single grid step: whole problem fits trivially in VMEM
        in_specs=[
            pl.BlockSpec((N, H, W, Cin), lambda i: (0, 0, 0, 0)),
            pl.BlockSpec((KH, KW, Cout, Cin), lambda i: (0, 0, 0, 0)),
            pl.BlockSpec((Cout, 1), lambda i: (0, 0)),
        ],
        out_specs=pl.BlockSpec((N, Cout, OH * OW), lambda i: (0, 0, 0)),
        compiler_params=pltpu.CompilerParams(dimension_semantics=("arbitrary",)),
    )(x_nhwc, w_hwoi, bias.reshape(Cout, 1))
    return y.reshape(N, Cout, OH, OW)        # free row-major reshape -> NCHW


# ------------------------------ Model forward ------------------------------ #
@jax.jit
def model_forward(x1_nchw, params):
    x_nhwc = jnp.transpose(x1_nchw, (0, 2, 3, 1))            # NCHW -> NHWC (C on lanes)
    x2 = conv2d_valid(x_nhwc, params["w"], params["b"])      # layer1, emitted as NCHW
    # x3 = self.layer2(x2) is computed and immediately deleted in the PyTorch
    # forward; it does not affect the output, so it is elided (== XLA DCE).
    # TODO(synk): x4 = self.layer2(x1) applies BatchNorm2d(4) to a 5-channel
    # input, which raises a RuntimeError in PyTorch; no valid semantics exist.
    return x2


if __name__ == "__main__":
    key = jax.random.PRNGKey(0)
    kx, kw, kb = jax.random.split(key, 3)

    # small input consistent with the module: N=2, Cin=5, H=W=10 (NCHW)
    x1 = jax.random.normal(kx, (2, 5, 10, 10), dtype=jnp.float32)

    # deterministic Conv2d(5, 4, 3) parameters (PyTorch-style uniform init)
    fan_in = 5 * 3 * 3
    bound = 1.0 / np.sqrt(fan_in)
    w_oihw = jax.random.uniform(kw, (4, 5, 3, 3), minval=-bound, maxval=bound,
                                dtype=jnp.float32)
    b = jax.random.uniform(kb, (4,), minval=-bound, maxval=bound, dtype=jnp.float32)

    params = dict(
        w=jnp.transpose(w_oihw, (2, 3, 0, 1)),   # OIHW -> (KH, KW, Cout, Cin)
        b=b,
    )

    x2 = model_forward(x1, params)
    x2 = jax.block_until_ready(x2)

    # sanity check of the Pallas conv against XLA's reference conv
    ref = jax.lax.conv_general_dilated(
        x1, w_oihw, window_strides=(1, 1), padding="VALID",
        dimension_numbers=("NCHW", "OIHW", "NCHW"),
        precision=jax.lax.Precision.HIGHEST) + b[None, :, None, None]
    np.testing.assert_allclose(np.asarray(x2), np.asarray(ref), rtol=1e-3, atol=1e-3)

    print("KERNEL_OK")
</pallas_src>

<mosaic_0001>
module attributes {stable_mosaic.version = 11 : i64} {
  func.func @_conv_kernel(%arg0: i32, %arg1: memref<2x10x10x5xf32, #tpu.memory_space<vmem>>, %arg2: memref<3x3x4x5xf32, #tpu.memory_space<vmem>>, %arg3: memref<4x1xf32, #tpu.memory_space<vmem>>, %arg4: memref<2x4x64xf32, #tpu.memory_space<vmem>>) attributes {dimension_semantics = [#tpu.dimension_semantics<arbitrary>], iteration_bounds = array<i64: 1>, scalar_prefetch = 0 : i64, scratch_operands = 0 : i64, tpu.core_type = #tpu.core_type<tc>, window_params = [{pipeline_mode = #tpu.pipeline_mode<synchronous>, transform_indices = @transform_0, window_bounds = array<i64: 2, 10, 10, 5>}, {pipeline_mode = #tpu.pipeline_mode<synchronous>, transform_indices = @transform_1, window_bounds = array<i64: 3, 3, 4, 5>}, {pipeline_mode = #tpu.pipeline_mode<synchronous>, transform_indices = @transform_2, window_bounds = array<i64: 4, 1>}, {pipeline_mode = #tpu.pipeline_mode<synchronous>, transform_indices = @transform_3, window_bounds = array<i64: 2, 4, 64>}]} {
    %c0 = arith.constant 0 : index
    %c0_0 = arith.constant 0 : index
    %0 = vector.load %arg3[%c0, %c0_0] : memref<4x1xf32, #tpu.memory_space<vmem>>, vector<4x1xf32>
    %cst = arith.constant 0.000000e+00 : f32
    %1 = vector.broadcast %cst : f32 to vector<4x64xf32>
    %c0_1 = arith.constant 0 : index
    %c0_2 = arith.constant 0 : index
    %c0_3 = arith.constant 0 : index
    %c0_4 = arith.constant 0 : index
    %2 = vector.load %arg1[%c0_1, %c0_2, %c0_3, %c0_4] : memref<2x10x10x5xf32, #tpu.memory_space<vmem>>, vector<1x8x8x5xf32>
    %3 = vector.shape_cast %2 : vector<1x8x8x5xf32> to vector<8x8x5xf32>
    %4 = vector.shape_cast %3 : vector<8x8x5xf32> to vector<64x5xf32>
    %c0_5 = arith.constant 0 : index
    %c0_6 = arith.constant 0 : index
    %c0_7 = arith.constant 0 : index
    %c0_8 = arith.constant 0 : index
    %5 = vector.load %arg2[%c0_5, %c0_6, %c0_7, %c0_8] : memref<3x3x4x5xf32, #tpu.memory_space<vmem>>, vector<1x1x4x5xf32>
    %6 = vector.shape_cast %5 : vector<1x1x4x5xf32> to vector<4x5xf32>
    %cst_9 = arith.constant dense<0.000000e+00> : vector<4x64xf32>
    %7 = tpu.matmul %6, %4, %cst_9 {dimension_numbers = #tpu.dot_dimension_numbers<[1], [1], [0], [0], [0, 0, 1, 0], [], []>} : vector<4x5xf32>, vector<64x5xf32>, vector<4x64xf32> -> vector<4x64xf32>
    %8 = arith.addf %1, %7 : vector<4x64xf32>
    %c0_10 = arith.constant 0 : index
    %c0_11 = arith.constant 0 : index
    %c1 = arith.constant 1 : index
    %c0_12 = arith.constant 0 : index
    %9 = vector.load %arg1[%c0_10, %c0_11, %c1, %c0_12] : memref<2x10x10x5xf32, #tpu.memory_space<vmem>>, vector<1x8x8x5xf32>
    %10 = vector.shape_cast %9 : vector<1x8x8x5xf32> to vector<8x8x5xf32>
    %11 = vector.shape_cast %10 : vector<8x8x5xf32> to vector<64x5xf32>
    %c0_13 = arith.constant 0 : index
    %c1_14 = arith.constant 1 : index
    %c0_15 = arith.constant 0 : index
    %c0_16 = arith.constant 0 : index
    %12 = vector.load %arg2[%c0_13, %c1_14, %c0_15, %c0_16] : memref<3x3x4x5xf32, #tpu.memory_space<vmem>>, vector<1x1x4x5xf32>
    %13 = vector.shape_cast %12 : vector<1x1x4x5xf32> to vector<4x5xf32>
    %cst_17 = arith.constant dense<0.000000e+00> : vector<4x64xf32>
    %14 = tpu.matmul %13, %11, %cst_17 {dimension_numbers = #tpu.dot_dimension_numbers<[1], [1], [0], [0], [0, 0, 1, 0], [], []>} : vector<4x5xf32>, vector<64x5xf32>, vector<4x64xf32> -> vector<4x64xf32>
    %15 = arith.addf %8, %14 : vector<4x64xf32>
    %c0_18 = arith.constant 0 : index
    %c0_19 = arith.constant 0 : index
    %c2 = arith.constant 2 : index
    %c0_20 = arith.constant 0 : index
    %16 = vector.load %arg1[%c0_18, %c0_19, %c2, %c0_20] : memref<2x10x10x5xf32, #tpu.memory_space<vmem>>, vector<1x8x8x5xf32>
    %17 = vector.shape_cast %16 : vector<1x8x8x5xf32> to vector<8x8x5xf32>
    %18 = vector.shape_cast %17 : vector<8x8x5xf32> to vector<64x5xf32>
    %c0_21 = arith.constant 0 : index
    %c2_22 = arith.constant 2 : index
    %c0_23 = arith.constant 0 : index
    %c0_24 = arith.constant 0 : index
    %19 = vector.load %arg2[%c0_21, %c2_22, %c0_23, %c0_24] : memref<3x3x4x5xf32, #tpu.memory_space<vmem>>, vector<1x1x4x5xf32>
    %20 = vector.shape_cast %19 : vector<1x1x4x5xf32> to vector<4x5xf32>
    %cst_25 = arith.constant dense<0.000000e+00> : vector<4x64xf32>
    %21 = tpu.matmul %20, %18, %cst_25 {dimension_numbers = #tpu.dot_dimension_numbers<[1], [1], [0], [0], [0, 0, 1, 0], [], []>} : vector<4x5xf32>, vector<64x5xf32>, vector<4x64xf32> -> vector<4x64xf32>
    %22 = arith.addf %15, %21 : vector<4x64xf32>
    %c0_26 = arith.constant 0 : index
    %c1_27 = arith.constant 1 : index
    %c0_28 = arith.constant 0 : index
    %c0_29 = arith.constant 0 : index
    %23 = vector.load %arg1[%c0_26, %c1_27, %c0_28, %c0_29] : memref<2x10x10x5xf32, #tpu.memory_space<vmem>>, vector<1x8x8x5xf32>
    %24 = vector.shape_cast %23 : vector<1x8x8x5xf32> to vector<8x8x5xf32>
    %25 = vector.shape_cast %24 : vector<8x8x5xf32> to vector<64x5xf32>
    %c1_30 = arith.constant 1 : index
    %c0_31 = arith.constant 0 : index
    %c0_32 = arith.constant 0 : index
    %c0_33 = arith.constant 0 : index
    %26 = vector.load %arg2[%c1_30, %c0_31, %c0_32, %c0_33] : memref<3x3x4x5xf32, #tpu.memory_space<vmem>>, vector<1x1x4x5xf32>
    %27 = vector.shape_cast %26 : vector<1x1x4x5xf32> to vector<4x5xf32>
    %cst_34 = arith.constant dense<0.000000e+00> : vector<4x64xf32>
    %28 = tpu.matmul %27, %25, %cst_34 {dimension_numbers = #tpu.dot_dimension_numbers<[1], [1], [0], [0], [0, 0, 1, 0], [], []>} : vector<4x5xf32>, vector<64x5xf32>, vector<4x64xf32> -> vector<4x64xf32>
    %29 = arith.addf %22, %28 : vector<4x64xf32>
    %c0_35 = arith.constant 0 : index
    %c1_36 = arith.constant 1 : index
    %c1_37 = arith.constant 1 : index
    %c0_38 = arith.constant 0 : index
    %30 = vector.load %arg1[%c0_35, %c1_36, %c1_37, %c0_38] : memref<2x10x10x5xf32, #tpu.memory_space<vmem>>, vector<1x8x8x5xf32>
    %31 = vector.shape_cast %30 : vector<1x8x8x5xf32> to vector<8x8x5xf32>
    %32 = vector.shape_cast %31 : vector<8x8x5xf32> to vector<64x5xf32>
    %c1_39 = arith.constant 1 : index
    %c1_40 = arith.constant 1 : index
    %c0_41 = arith.constant 0 : index
    %c0_42 = arith.constant 0 : index
    %33 = vector.load %arg2[%c1_39, %c1_40, %c0_41, %c0_42] : memref<3x3x4x5xf32, #tpu.memory_space<vmem>>, vector<1x1x4x5xf32>
    %34 = vector.shape_cast %33 : vector<1x1x4x5xf32> to vector<4x5xf32>
    %cst_43 = arith.constant dense<0.000000e+00> : vector<4x64xf32>
    %35 = tpu.matmul %34, %32, %cst_43 {dimension_numbers = #tpu.dot_dimension_numbers<[1], [1], [0], [0], [0, 0, 1, 0], [], []>} : vector<4x5xf32>, vector<64x5xf32>, vector<4x64xf32> -> vector<4x64xf32>
    %36 = arith.addf %29, %35 : vector<4x64xf32>
    %c0_44 = arith.constant 0 : index
    %c1_45 = arith.constant 1 : index
    %c2_46 = arith.constant 2 : index
    %c0_47 = arith.constant 0 : index
    %37 = vector.load %arg1[%c0_44, %c1_45, %c2_46, %c0_47] : memref<2x10x10x5xf32, #tpu.memory_space<vmem>>, vector<1x8x8x5xf32>
    %38 = vector.shape_cast %37 : vector<1x8x8x5xf32> to vector<8x8x5xf32>
    %39 = vector.shape_cast %38 : vector<8x8x5xf32> to vector<64x5xf32>
    %c1_48 = arith.constant 1 : index
    %c2_49 = arith.constant 2 : index
    %c0_50 = arith.constant 0 : index
    %c0_51 = arith.constant 0 : index
    %40 = vector.load %arg2[%c1_48, %c2_49, %c0_50, %c0_51] : memref<3x3x4x5xf32, #tpu.memory_space<vmem>>, vector<1x1x4x5xf32>
    %41 = vector.shape_cast %40 : vector<1x1x4x5xf32> to vector<4x5xf32>
    %cst_52 = arith.constant dense<0.000000e+00> : vector<4x64xf32>
    %42 = tpu.matmul %41, %39, %cst_52 {dimension_numbers = #tpu.dot_dimension_numbers<[1], [1], [0], [0], [0, 0, 1, 0], [], []>} : vector<4x5xf32>, vector<64x5xf32>, vector<4x64xf32> -> vector<4x64xf32>
    %43 = arith.addf %36, %42 : vector<4x64xf32>
    %c0_53 = arith.constant 0 : index
    %c2_54 = arith.constant 2 : index
    %c0_55 = arith.constant 0 : index
    %c0_56 = arith.constant 0 : index
    %44 = vector.load %arg1[%c0_53, %c2_54, %c0_55, %c0_56] : memref<2x10x10x5xf32, #tpu.memory_space<vmem>>, vector<1x8x8x5xf32>
    %45 = vector.shape_cast %44 : vector<1x8x8x5xf32> to vector<8x8x5xf32>
    %46 = vector.shape_cast %45 : vector<8x8x5xf32> to vector<64x5xf32>
    %c2_57 = arith.constant 2 : index
    %c0_58 = arith.constant 0 : index
    %c0_59 = arith.constant 0 : index
    %c0_60 = arith.constant 0 : index
    %47 = vector.load %arg2[%c2_57, %c0_58, %c0_59, %c0_60] : memref<3x3x4x5xf32, #tpu.memory_space<vmem>>, vector<1x1x4x5xf32>
    %48 = vector.shape_cast %47 : vector<1x1x4x5xf32> to vector<4x5xf32>
    %cst_61 = arith.constant dense<0.000000e+00> : vector<4x64xf32>
    %49 = tpu.matmul %48, %46, %cst_61 {dimension_numbers = #tpu.dot_dimension_numbers<[1], [1], [0], [0], [0, 0, 1, 0], [], []>} : vector<4x5xf32>, vector<64x5xf32>, vector<4x64xf32> -> vector<4x64xf32>
    %50 = arith.addf %43, %49 : vector<4x64xf32>
    %c0_62 = arith.constant 0 : index
    %c2_63 = arith.constant 2 : index
    %c1_64 = arith.constant 1 : index
    %c0_65 = arith.constant 0 : index
    %51 = vector.load %arg1[%c0_62, %c2_63, %c1_64, %c0_65] : memref<2x10x10x5xf32, #tpu.memory_space<vmem>>, vector<1x8x8x5xf32>
    %52 = vector.shape_cast %51 : vector<1x8x8x5xf32> to vector<8x8x5xf32>
    %53 = vector.shape_cast %52 : vector<8x8x5xf32> to vector<64x5xf32>
    %c2_66 = arith.constant 2 : index
    %c1_67 = arith.constant 1 : index
    %c0_68 = arith.constant 0 : index
    %c0_69 = arith.constant 0 : index
    %54 = vector.load %arg2[%c2_66, %c1_67, %c0_68, %c0_69] : memref<3x3x4x5xf32, #tpu.memory_space<vmem>>, vector<1x1x4x5xf32>
    %55 = vector.shape_cast %54 : vector<1x1x4x5xf32> to vector<4x5xf32>
    %cst_70 = arith.constant dense<0.000000e+00> : vector<4x64xf32>
    %56 = tpu.matmul %55, %53, %cst_70 {dimension_numbers = #tpu.dot_dimension_numbers<[1], [1], [0], [0], [0, 0, 1, 0], [], []>} : vector<4x5xf32>, vector<64x5xf32>, vector<4x64xf32> -> vector<4x64xf32>
    %57 = arith.addf %50, %56 : vector<4x64xf32>
    %c0_71 = arith.constant 0 : index
    %c2_72 = arith.constant 2 : index
    %c2_73 = arith.constant 2 : index
    %c0_74 = arith.constant 0 : index
    %58 = vector.load %arg1[%c0_71, %c2_72, %c2_73, %c0_74] : memref<2x10x10x5xf32, #tpu.memory_space<vmem>>, vector<1x8x8x5xf32>
    %59 = vector.shape_cast %58 : vector<1x8x8x5xf32> to vector<8x8x5xf32>
    %60 = vector.shape_cast %59 : vector<8x8x5xf32> to vector<64x5xf32>
    %c2_75 = arith.constant 2 : index
    %c2_76 = arith.constant 2 : index
    %c0_77 = arith.constant 0 : index
    %c0_78 = arith.constant 0 : index
    %61 = vector.load %arg2[%c2_75, %c2_76, %c0_77, %c0_78] : memref<3x3x4x5xf32, #tpu.memory_space<vmem>>, vector<1x1x4x5xf32>
    %62 = vector.shape_cast %61 : vector<1x1x4x5xf32> to vector<4x5xf32>
    %cst_79 = arith.constant dense<0.000000e+00> : vector<4x64xf32>
    %63 = tpu.matmul %62, %60, %cst_79 {dimension_numbers = #tpu.dot_dimension_numbers<[1], [1], [0], [0], [0, 0, 1, 0], [], []>} : vector<4x5xf32>, vector<64x5xf32>, vector<4x64xf32> -> vector<4x64xf32>
    %64 = arith.addf %57, %63 : vector<4x64xf32>
    %65 = vector.broadcast %0 : vector<4x1xf32> to vector<4x64xf32>
    %66 = arith.addf %64, %65 : vector<4x64xf32>
    %c0_80 = arith.constant 0 : index
    %c0_81 = arith.constant 0 : index
    %c0_82 = arith.constant 0 : index
    %67 = vector.load %arg4[%c0_80, %c0_81, %c0_82] : memref<2x4x64xf32, #tpu.memory_space<vmem>>, vector<1x4x64xf32>
    %68 = vector.shape_cast %67 : vector<1x4x64xf32> to vector<4x64xf32>
    %69 = vector.shape_cast %66 : vector<4x64xf32> to vector<1x4x64xf32>
    tpu.vector_store %arg4[%c0_80, %c0_81, %c0_82], %69 {strides = array<i32>} : memref<2x4x64xf32, #tpu.memory_space<vmem>>, vector<1x4x64xf32>,
    %cst_83 = arith.constant 0.000000e+00 : f32
    %70 = vector.broadcast %cst_83 : f32 to vector<4x64xf32>
    %c1_84 = arith.constant 1 : index
    %c0_85 = arith.constant 0 : index
    %c0_86 = arith.constant 0 : index
    %c0_87 = arith.constant 0 : index
    %71 = vector.load %arg1[%c1_84, %c0_85, %c0_86, %c0_87] : memref<2x10x10x5xf32, #tpu.memory_space<vmem>>, vector<1x8x8x5xf32>
    %72 = vector.shape_cast %71 : vector<1x8x8x5xf32> to vector<8x8x5xf32>
    %73 = vector.shape_cast %72 : vector<8x8x5xf32> to vector<64x5xf32>
    %c0_88 = arith.constant 0 : index
    %c0_89 = arith.constant 0 : index
    %c0_90 = arith.constant 0 : index
    %c0_91 = arith.constant 0 : index
    %74 = vector.load %arg2[%c0_88, %c0_89, %c0_90, %c0_91] : memref<3x3x4x5xf32, #tpu.memory_space<vmem>>, vector<1x1x4x5xf32>
    %75 = vector.shape_cast %74 : vector<1x1x4x5xf32> to vector<4x5xf32>
    %cst_92 = arith.constant dense<0.000000e+00> : vector<4x64xf32>
    %76 = tpu.matmul %75, %73, %cst_92 {dimension_numbers = #tpu.dot_dimension_numbers<[1], [1], [0], [0], [0, 0, 1, 0], [], []>} : vector<4x5xf32>, vector<64x5xf32>, vector<4x64xf32> -> vector<4x64xf32>
    %77 = arith.addf %70, %76 : vector<4x64xf32>
    %c1_93 = arith.constant 1 : index
    %c0_94 = arith.constant 0 : index
    %c1_95 = arith.constant 1 : index
    %c0_96 = arith.constant 0 : index
    %78 = vector.load %arg1[%c1_93, %c0_94, %c1_95, %c0_96] : memref<2x10x10x5xf32, #tpu.memory_space<vmem>>, vector<1x8x8x5xf32>
    %79 = vector.shape_cast %78 : vector<1x8x8x5xf32> to vector<8x8x5xf32>
    %80 = vector.shape_cast %79 : vector<8x8x5xf32> to vector<64x5xf32>
    %c0_97 = arith.constant 0 : index
    %c1_98 = arith.constant 1 : index
    %c0_99 = arith.constant 0 : index
    %c0_100 = arith.constant 0 : index
    %81 = vector.load %arg2[%c0_97, %c1_98, %c0_99, %c0_100] : memref<3x3x4x5xf32, #tpu.memory_space<vmem>>, vector<1x1x4x5xf32>
    %82 = vector.shape_cast %81 : vector<1x1x4x5xf32> to vector<4x5xf32>
    %cst_101 = arith.constant dense<0.000000e+00> : vector<4x64xf32>
    %83 = tpu.matmul %82, %80, %cst_101 {dimension_numbers = #tpu.dot_dimension_numbers<[1], [1], [0], [0], [0, 0, 1, 0], [], []>} : vector<4x5xf32>, vector<64x5xf32>, vector<4x64xf32> -> vector<4x64xf32>
    %84 = arith.addf %77, %83 : vector<4x64xf32>
    %c1_102 = arith.constant 1 : index
    %c0_103 = arith.constant 0 : index
    %c2_104 = arith.constant 2 : index
    %c0_105 = arith.constant 0 : index
    %85 = vector.load %arg1[%c1_102, %c0_103, %c2_104, %c0_105] : memref<2x10x10x5xf32, #tpu.memory_space<vmem>>, vector<1x8x8x5xf32>
    %86 = vector.shape_cast %85 : vector<1x8x8x5xf32> to vector<8x8x5xf32>
    %87 = vector.shape_cast %86 : vector<8x8x5xf32> to vector<64x5xf32>
    %c0_106 = arith.constant 0 : index
    %c2_107 = arith.constant 2 : index
    %c0_108 = arith.constant 0 : index
    %c0_109 = arith.constant 0 : index
    %88 = vector.load %arg2[%c0_106, %c2_107, %c0_108, %c0_109] : memref<3x3x4x5xf32, #tpu.memory_space<vmem>>, vector<1x1x4x5xf32>
    %89 = vector.shape_cast %88 : vector<1x1x4x5xf32> to vector<4x5xf32>
    %cst_110 = arith.constant dense<0.000000e+00> : vector<4x64xf32>
    %90 = tpu.matmul %89, %87, %cst_110 {dimension_numbers = #tpu.dot_dimension_numbers<[1], [1], [0], [0], [0, 0, 1, 0], [], []>} : vector<4x5xf32>, vector<64x5xf32>, vector<4x64xf32> -> vector<4x64xf32>
    %91 = arith.addf %84, %90 : vector<4x64xf32>
    %c1_111 = arith.constant 1 : index
    %c1_112 = arith.constant 1 : index
    %c0_113 = arith.constant 0 : index
    %c0_114 = arith.constant 0 : index
    %92 = vector.load %arg1[%c1_111, %c1_112, %c0_113, %c0_114] : memref<2x10x10x5xf32, #tpu.memory_space<vmem>>, vector<1x8x8x5xf32>
    %93 = vector.shape_cast %92 : vector<1x8x8x5xf32> to vector<8x8x5xf32>
    %94 = vector.shape_cast %93 : vector<8x8x5xf32> to vector<64x5xf32>
    %c1_115 = arith.constant 1 : index
    %c0_116 = arith.constant 0 : index
    %c0_117 = arith.constant 0 : index
    %c0_118 = arith.constant 0 : index
    %95 = vector.load %arg2[%c1_115, %c0_116, %c0_117, %c0_118] : memref<3x3x4x5xf32, #tpu.memory_space<vmem>>, vector<1x1x4x5xf32>
    %96 = vector.shape_cast %95 : vector<1x1x4x5xf32> to vector<4x5xf32>
    %cst_119 = arith.constant dense<0.000000e+00> : vector<4x64xf32>
    %97 = tpu.matmul %96, %94, %cst_119 {dimension_numbers = #tpu.dot_dimension_numbers<[1], [1], [0], [0], [0, 0, 1, 0], [], []>} : vector<4x5xf32>, vector<64x5xf32>, vector<4x64xf32> -> vector<4x64xf32>
    %98 = arith.addf %91, %97 : vector<4x64xf32>
    %c1_120 = arith.constant 1 : index
    %c1_121 = arith.constant 1 : index
    %c1_122 = arith.constant 1 : index
    %c0_123 = arith.constant 0 : index
    %99 = vector.load %arg1[%c1_120, %c1_121, %c1_122, %c0_123] : memref<2x10x10x5xf32, #tpu.memory_space<vmem>>, vector<1x8x8x5xf32>
    %100 = vector.shape_cast %99 : vector<1x8x8x5xf32> to vector<8x8x5xf32>
    %101 = vector.shape_cast %100 : vector<8x8x5xf32> to vector<64x5xf32>
    %c1_124 = arith.constant 1 : index
    %c1_125 = arith.constant 1 : index
    %c0_126 = arith.constant 0 : index
    %c0_127 = arith.constant 0 : index
    %102 = vector.load %arg2[%c1_124, %c1_125, %c0_126, %c0_127] : memref<3x3x4x5xf32, #tpu.memory_space<vmem>>, vector<1x1x4x5xf32>
    %103 = vector.shape_cast %102 : vector<1x1x4x5xf32> to vector<4x5xf32>
    %cst_128 = arith.constant dense<0.000000e+00> : vector<4x64xf32>
    %104 = tpu.matmul %103, %101, %cst_128 {dimension_numbers = #tpu.dot_dimension_numbers<[1], [1], [0], [0], [0, 0, 1, 0], [], []>} : vector<4x5xf32>, vector<64x5xf32>, vector<4x64xf32> -> vector<4x64xf32>
    %105 = arith.addf %98, %104 : vector<4x64xf32>
    %c1_129 = arith.constant 1 : index
    %c1_130 = arith.constant 1 : index
    %c2_131 = arith.constant 2 : index
    %c0_132 = arith.constant 0 : index
    %106 = vector.load %arg1[%c1_129, %c1_130, %c2_131, %c0_132] : memref<2x10x10x5xf32, #tpu.memory_space<vmem>>, vector<1x8x8x5xf32>
    %107 = vector.shape_cast %106 : vector<1x8x8x5xf32> to vector<8x8x5xf32>
    %108 = vector.shape_cast %107 : vector<8x8x5xf32> to vector<64x5xf32>
    %c1_133 = arith.constant 1 : index
    %c2_134 = arith.constant 2 : index
    %c0_135 = arith.constant 0 : index
    %c0_136 = arith.constant 0 : index
    %109 = vector.load %arg2[%c1_133, %c2_134, %c0_135, %c0_136] : memref<3x3x4x5xf32, #tpu.memory_space<vmem>>, vector<1x1x4x5xf32>
    %110 = vector.shape_cast %109 : vector<1x1x4x5xf32> to vector<4x5xf32>
    %cst_137 = arith.constant dense<0.000000e+00> : vector<4x64xf32>
    %111 = tpu.matmul %110, %108, %cst_137 {dimension_numbers = #tpu.dot_dimension_numbers<[1], [1], [0], [0], [0, 0, 1, 0], [], []>} : vector<4x5xf32>, vector<64x5xf32>, vector<4x64xf32> -> vector<4x64xf32>
    %112 = arith.addf %105, %111 : vector<4x64xf32>
    %c1_138 = arith.constant 1 : index
    %c2_139 = arith.constant 2 : index
    %c0_140 = arith.constant 0 : index
    %c0_141 = arith.constant 0 : index
    %113 = vector.load %arg1[%c1_138, %c2_139, %c0_140, %c0_141] : memref<2x10x10x5xf32, #tpu.memory_space<vmem>>, vector<1x8x8x5xf32>
    %114 = vector.shape_cast %113 : vector<1x8x8x5xf32> to vector<8x8x5xf32>
    %115 = vector.shape_cast %114 : vector<8x8x5xf32> to vector<64x5xf32>
    %c2_142 = arith.constant 2 : index
    %c0_143 = arith.constant 0 : index
    %c0_144 = arith.constant 0 : index
    %c0_145 = arith.constant 0 : index
    %116 = vector.load %arg2[%c2_142, %c0_143, %c0_144, %c0_145] : memref<3x3x4x5xf32, #tpu.memory_space<vmem>>, vector<1x1x4x5xf32>
    %117 = vector.shape_cast %116 : vector<1x1x4x5xf32> to vector<4x5xf32>
    %cst_146 = arith.constant dense<0.000000e+00> : vector<4x64xf32>
    %118 = tpu.matmul %117, %115, %cst_146 {dimension_numbers = #tpu.dot_dimension_numbers<[1], [1], [0], [0], [0, 0, 1, 0], [], []>} : vector<4x5xf32>, vector<64x5xf32>, vector<4x64xf32> -> vector<4x64xf32>
    %119 = arith.addf %112, %118 : vector<4x64xf32>
    %c1_147 = arith.constant 1 : index
    %c2_148 = arith.constant 2 : index
    %c1_149 = arith.constant 1 : index
    %c0_150 = arith.constant 0 : index
    %120 = vector.load %arg1[%c1_147, %c2_148, %c1_149, %c0_150] : memref<2x10x10x5xf32, #tpu.memory_space<vmem>>, vector<1x8x8x5xf32>
    %121 = vector.shape_cast %120 : vector<1x8x8x5xf32> to vector<8x8x5xf32>
    %122 = vector.shape_cast %121 : vector<8x8x5xf32> to vector<64x5xf32>
    %c2_151 = arith.constant 2 : index
    %c1_152 = arith.constant 1 : index
    %c0_153 = arith.constant 0 : index
    %c0_154 = arith.constant 0 : index
    %123 = vector.load %arg2[%c2_151, %c1_152, %c0_153, %c0_154] : memref<3x3x4x5xf32, #tpu.memory_space<vmem>>, vector<1x1x4x5xf32>
    %124 = vector.shape_cast %123 : vector<1x1x4x5xf32> to vector<4x5xf32>
    %cst_155 = arith.constant dense<0.000000e+00> : vector<4x64xf32>
    %125 = tpu.matmul %124, %122, %cst_155 {dimension_numbers = #tpu.dot_dimension_numbers<[1], [1], [0], [0], [0, 0, 1, 0], [], []>} : vector<4x5xf32>, vector<64x5xf32>, vector<4x64xf32> -> vector<4x64xf32>
    %126 = arith.addf %119, %125 : vector<4x64xf32>
    %c1_156 = arith.constant 1 : index
    %c2_157 = arith.constant 2 : index
    %c2_158 = arith.constant 2 : index
    %c0_159 = arith.constant 0 : index
    %127 = vector.load %arg1[%c1_156, %c2_157, %c2_158, %c0_159] : memref<2x10x10x5xf32, #tpu.memory_space<vmem>>, vector<1x8x8x5xf32>
    %128 = vector.shape_cast %127 : vector<1x8x8x5xf32> to vector<8x8x5xf32>
    %129 = vector.shape_cast %128 : vector<8x8x5xf32> to vector<64x5xf32>
    %c2_160 = arith.constant 2 : index
    %c2_161 = arith.constant 2 : index
    %c0_162 = arith.constant 0 : index
    %c0_163 = arith.constant 0 : index
    %130 = vector.load %arg2[%c2_160, %c2_161, %c0_162, %c0_163] : memref<3x3x4x5xf32, #tpu.memory_space<vmem>>, vector<1x1x4x5xf32>
    %131 = vector.shape_cast %130 : vector<1x1x4x5xf32> to vector<4x5xf32>
    %cst_164 = arith.constant dense<0.000000e+00> : vector<4x64xf32>
    %132 = tpu.matmul %131, %129, %cst_164 {dimension_numbers = #tpu.dot_dimension_numbers<[1], [1], [0], [0], [0, 0, 1, 0], [], []>} : vector<4x5xf32>, vector<64x5xf32>, vector<4x64xf32> -> vector<4x64xf32>
    %133 = arith.addf %126, %132 : vector<4x64xf32>
    %134 = vector.broadcast %0 : vector<4x1xf32> to vector<4x64xf32>
    %135 = arith.addf %133, %134 : vector<4x64xf32>
    %c1_165 = arith.constant 1 : index
    %c0_166 = arith.constant 0 : index
    %c0_167 = arith.constant 0 : index
    %136 = vector.load %arg4[%c1_165, %c0_166, %c0_167] : memref<2x4x64xf32, #tpu.memory_space<vmem>>, vector<1x4x64xf32>
    %137 = vector.shape_cast %136 : vector<1x4x64xf32> to vector<4x64xf32>
    %138 = vector.shape_cast %135 : vector<4x64xf32> to vector<1x4x64xf32>
    tpu.vector_store %arg4[%c1_165, %c0_166, %c0_167], %138 {strides = array<i32>} : memref<2x4x64xf32, #tpu.memory_space<vmem>>, vector<1x4x64xf32>,
    return
  }
  func.func @transform_0(%arg0: i32) -> (i32, i32, i32, i32) {
    %c0_i32 = arith.constant 0 : i32
    %c0_i32_0 = arith.constant 0 : i32
    %c0_i32_1 = arith.constant 0 : i32
    %c0_i32_2 = arith.constant 0 : i32
    %c0_i32_3 = arith.constant 0 : i32
    return %c0_i32, %c0_i32_0, %c0_i32_1, %c0_i32_2 : i32, i32, i32, i32
  }
  func.func @transform_1(%arg0: i32) -> (i32, i32, i32, i32) {
    %c0_i32 = arith.constant 0 : i32
    %c0_i32_0 = arith.constant 0 : i32
    %c0_i32_1 = arith.constant 0 : i32
    %c0_i32_2 = arith.constant 0 : i32
    %c0_i32_3 = arith.constant 0 : i32
    return %c0_i32, %c0_i32_0, %c0_i32_1, %c0_i32_2 : i32, i32, i32, i32
  }
  func.func @transform_2(%arg0: i32) -> (i32, i32) {
    %c0_i32 = arith.constant 0 : i32
    %c0_i32_0 = arith.constant 0 : i32
    %c0_i32_1 = arith.constant 0 : i32
    return %c0_i32, %c0_i32_0 : i32, i32
  }
  func.func @transform_3(%arg0: i32) -> (i32, i32, i32) {
    %c0_i32 = arith.constant 0 : i32
    %c0_i32_0 = arith.constant 0 : i32
    %c0_i32_1 = arith.constant 0 : i32
    %c0_i32_2 = arith.constant 0 : i32
    return %c0_i32, %c0_i32_0, %c0_i32_1 : i32, i32, i32
  }
}

</mosaic_0001>

<bundles_post_ra>
// kernel: model_forward.1
= control target key start
LH: loop header
LB: loop body
LE: loop exit
PB: predicated region body
PF: predicated region fallthrough
CT: control target
= control target key end

     0   :  { %vm34_vm0 = vcmask 39936   ;;  %v2773_v0 = vmov 0.0   ;;  %vm2774_vm1 = vmmov 0   ;;  %v2775_v37 = vmov 0   ;;  %s3587_s0 = inlined_call_operand.vmem [shape: f32[2,10,10,5], index: 0, kind: input, shape index: {}]   ;;  %s3588_s1 = inlined_call_operand.vmem [shape: f32[3,3,4,5], index: 1, kind: input, shape index: {}]   ;;  %s3589_s2 = inlined_call_operand.vmem [shape: f32[4,1], index: 2, kind: input, shape index: {}]   ;;  %s3590_s3 = inlined_call_operand.vmem [shape: f32[2,4,64], index: 3, kind: output, shape index: {}]  }
   0x1   :  { %2427 = vmatprep.subr.mxu0 %v2773_v0  ;;  %2446 = vmatprep.subr.mxu1 %v2773_v0  ;;  %v2801_v1 = vld [vmem:[%s3587_s0 + $0x71] sm:$0xff]  ;;  %v2817_v3 = vld [vmem:[%s3587_s0 + $0x61] sm:$0xff]  ;;  %v2003_v29 = vld [vmem:[%s3588_s1 + $0xc] sm:$0xf]  ;;  %vm993_vm2 = vcmask 519168  }
   0x2   :  { %v2806_v2 = vld [vmem:[%s3587_s0 + $0x70] sm:$0xff]  ;;  %2428 = vmatpush3.xpose.msk.msra.mxu0 %vm34_vm0, %v2801_v1  ;;  %v2822_v4 = vld [vmem:[%s3587_s0 + $0x60] sm:$0xff]  ;;  %2443 = vmatprep.mubr.msk.f32.mxu0 %vm2774_vm1, %v2773_v0  ;;  %v1985_v28 = vld [vmem:[%s3588_s1 + $0x8] sm:$0xf] }
   0x3   :  { %2447 = vmatpush3.xpose.msk.msra.mxu1 %vm34_vm0, %v2806_v2  ;;  %2429 = vmatprep.subr.mxu0 %v2773_v0  ;;  %v2837_v5 = vld [vmem:[%s3587_s0 + $0x51] sm:$0xff]  ;;  %v2853_v7 = vld [vmem:[%s3587_s0 + $0x41] sm:$0xff]  ;;  %v2075_v39 = vld [vmem:[%s3588_s1 + $0x1c] sm:$0xf] }
   0x4   :  { %2448 = vmatprep.subr.mxu1 %v2773_v0  ;;  %2462 = vmatprep.mubr.msk.f32.mxu1 %vm2774_vm1, %v2773_v0  ;;  %v2842_v6 = vld [vmem:[%s3587_s0 + $0x50] sm:$0xff]  ;;  %v2858_v8 = vld [vmem:[%s3587_s0 + $0x40] sm:$0xff]  ;;  %v2057_v38 = vld [vmem:[%s3588_s1 + $0x18] sm:$0xf] }
   0x5   :  { %v2869_v9 = vld [vmem:[%s3587_s0 + $0x31] sm:$0xff]  ;;  %v2885_v11 = vld [vmem:[%s3587_s0 + $0x21] sm:$0xff]  ;;  %2772 = vset.pattern.permute.xlu0 %v2775_v37 }
   0x6   :  { %2430 = vmatpush3.xpose.msk.msra.mxu0 %vm34_vm0, %v2817_v3  ;;  %v2874_v10 = vld [vmem:[%s3587_s0 + $0x30] sm:$0xff]  ;;  %v2890_v12 = vld [vmem:[%s3587_s0 + $0x20] sm:$0xff] }
   0x7   :  { %2449 = vmatpush3.xpose.msk.msra.mxu1 %vm34_vm0, %v2822_v4  ;;  %2431 = vmatprep.subr.mxu0 %v2773_v0  ;;  %v2901_v13 = vld [vmem:[%s3587_s0 + $0x11] sm:$0xff]  ;;  %v24_v15 = vld [vmem:[%s3587_s0 + $0x1] sm:$0xff] }
   0x8   :  { %2450 = vmatprep.subr.mxu1 %v2773_v0  ;;  %v16_v14 = vld [vmem:[%s3587_s0 + $0x10] sm:$0xff]  ;;  %v15_v16 = vld [vmem:[%s3587_s0] sm:$0xff] }
   0x9   :  { %v1966_v17 = vld [vmem:[%s3588_s1 + $0x4] sm:$0xf]  ;;  %v23_v18 = vld [vmem:[%s3588_s1] sm:$0xf]  ;;  %v2930_v19 = vld [vmem:[%s3587_s0 + $0x72] sm:$0xff] }
   0xa   :  { %2432 = vmatpush3.xpose.msk.msra.mxu0 %vm34_vm0, %v2837_v5  ;;  %v2935_v20 = vld [vmem:[%s3587_s0 + $0x80] sm:$0xff]  ;;  %v2963_v22 = vld [vmem:[%s3587_s0 + $0x52] sm:$0xff] }
   0xb   :  { %2451 = vmatpush3.xpose.msk.msra.mxu1 %vm34_vm0, %v2842_v6  ;;  %2433 = vmatprep.subr.mxu0 %v2773_v0  ;;  %v2948_v21 = vld [vmem:[%s3587_s0 + $0x62] sm:$0xff]  ;;  %v2985_v24 = vld [vmem:[%s3587_s0 + $0x32] sm:$0xff] }
   0xc   :  { %2452 = vmatprep.subr.mxu1 %v2773_v0  ;;  %v2974_v23 = vld [vmem:[%s3587_s0 + $0x42] sm:$0xff]  ;;  %v230_v26 = vld [vmem:[%s3587_s0 + $0x12] sm:$0xff] }
   0xd   :  { %v2996_v25 = vld [vmem:[%s3587_s0 + $0x22] sm:$0xff]  ;;  %v2021_v32 = vld [vmem:[%s3588_s1 + $0x10] sm:$0xf]  ;;  %v2039_v33 = vld [vmem:[%s3588_s1 + $0x14] sm:$0xf] }
   0xe   :  { %2434 = vmatpush3.xpose.msk.msra.mxu0 %vm34_vm0, %v2853_v7  ;;  %v229_v27 = vld [vmem:[%s3587_s0 + $0x2] sm:$0xff]  ;;  %v2056_v34 = vld [vmem:[%s3587_s0 + $0x90] sm:$0xff] }
   0xf   :  { %2453 = vmatpush3.xpose.msk.msra.mxu1 %vm34_vm0, %v2858_v8  ;;  %2435 = vmatprep.subr.mxu0 %v2773_v0  ;;  %v2020_v30 = vld [vmem:[%s3587_s0 + $0x81] sm:$0xff]  ;;  %v2074_v35 = vld [vmem:[%s3587_s0 + $0x91] sm:$0xff] }
  0x10   :  { %2454 = vmatprep.subr.mxu1 %v2773_v0  ;;  %v3031_v31 = vld [vmem:[%s3587_s0 + $0x82] sm:$0xff]  ;;  %v2092_v40 = vld [vmem:[%s3587_s0 + $0x92] sm:$0xff] }
  0x11   :  { %v14_v36 = vld [vmem:[%s3589_s2] sm:$0xf]  ;;  %v3163_v41 = vld [vmem:[%s3587_s0 + $0x111] sm:$0xff]  ;;  %v2119_v50 = vld [vmem:[%s3588_s1 + $0x4] sm:$0xf] }
  0x12   :  { %2436 = vmatpush3.xpose.msk.msra.mxu0 %vm34_vm0, %v2869_v9  ;;  %989 = vperm.xlu0 %2772, %v14_v36   ;;  %v3175_v42 = vld [vmem:[%s3587_s0 + $0x101] sm:$0xff]  ;;  %v3190_v43 = vld [vmem:[%s3587_s0 + $0xf1] sm:$0xff] }
  0x13   :  { %2455 = vmatpush3.xpose.msk.msra.mxu1 %vm34_vm0, %v2874_v10  ;;  %2437 = vmatprep.subr.mxu0 %v2773_v0  ;;  %v3201_v44 = vld [vmem:[%s3587_s0 + $0xe1] sm:$0xff]  ;;  %v3212_v45 = vld [vmem:[%s3587_s0 + $0xd1] sm:$0xff] }
  0x14   :  { %2456 = vmatprep.subr.mxu1 %v2773_v0  ;;  %v3223_v46 = vld [vmem:[%s3587_s0 + $0xc1] sm:$0xff]  ;;  %v3234_v47 = vld [vmem:[%s3587_s0 + $0xb1] sm:$0xff] }
  0x15   :  { %v2111_v48 = vld [vmem:[%s3587_s0 + $0xa1] sm:$0xff]  ;;  %v3259_v51 = vld [vmem:[%s3587_s0 + $0x110] sm:$0xff] }
  0x16   :  { %2438 = vmatpush3.xpose.msk.msra.mxu0 %vm34_vm0, %v2885_v11  ;;  %v2093_v49 = vld [vmem:[%s3588_s1 + $0x20] sm:$0xf]  ;;  %v3264_v52 = vld [vmem:[%s3587_s0 + $0x112] sm:$0xff] }
  0x17   :  { %2457 = vmatpush3.xpose.msk.msra.mxu1 %vm34_vm0, %v2890_v12  ;;  %2439 = vmatprep.subr.mxu0 %v2773_v0  ;;  %v3277_v53 = vld [vmem:[%s3587_s0 + $0x100] sm:$0xff]  ;;  %v3297_v55 = vld [vmem:[%s3587_s0 + $0xf0] sm:$0xff] }
  0x18   :  { %2458 = vmatprep.subr.mxu1 %v2773_v0  ;;  %v3282_v54 = vld [vmem:[%s3587_s0 + $0x102] sm:$0xff]  ;;  %v3302_v56 = vld [vmem:[%s3587_s0 + $0xf2] sm:$0xff] }
  0x19   :  { %v3313_v57 = vld [vmem:[%s3587_s0 + $0xe0] sm:$0xff]  ;;  %v3329_v59 = vld [vmem:[%s3587_s0 + $0xd0] sm:$0xff] }
  0x1a   :  { %2440 = vmatpush3.xpose.msk.msra.mxu0 %vm34_vm0, %v2901_v13  ;;  %v3318_v58 = vld [vmem:[%s3587_s0 + $0xe2] sm:$0xff]  ;;  %v3334_v60 = vld [vmem:[%s3587_s0 + $0xd2] sm:$0xff] }
  0x1b   :  { %2459 = vmatpush3.xpose.msk.msra.mxu1 %vm34_vm0, %v16_v14  ;;  %2441 = vmatprep.subr.mxu0 %v2773_v0  ;;  %v3345_v61 = vld [vmem:[%s3587_s0 + $0xc0] sm:$0xff]  ;;  %v2104_v63 = vld [vmem:[%s3587_s0 + $0xb0] sm:$0xff] }
  0x1c   :  { %2460 = vmatprep.subr.mxu1 %v2773_v0  ;;  %v3350_v62 = vld [vmem:[%s3587_s0 + $0xc2] sm:$0xff] }
  0x1e   :  { %2442 = vmatpush3.xpose.msk.msra.mxu0 %vm34_vm0, %v24_v15 }
  0x1f   :  { %2461 = vmatpush3.xpose.msk.msra.mxu1 %vm34_vm0, %v15_v16  ;;  %2465 = vmatprep.subr.mxu0 %v2773_v0 }
  0x20   :  { %2484 = vmatprep.subr.mxu1 %v2773_v0 }
  0x21   :  { %2444 = vmatmul.mubr.msk.f32.vlgmr.msra.gmra.mxu0 %vm34_vm0, %v1966_v17  ;;  %v2200_v17 = vld [vmem:[%s3588_s1 + $0x14] sm:$0xf] }
  0x22   :  { %2463 = vmatmul.mubr.msk.f32.vlgmr.msra.gmra.mxu1 %vm34_vm0, %v23_v18  ;;  %2466 = vmatpush3.xpose.msk.msra.mxu0 %vm34_vm0, %v2930_v19  ;;  %v2218_v18 = vld [vmem:[%s3588_s1 + $0x18] sm:$0xf] }
  0x23   :  { %2485 = vmatpush3.xpose.msk.msra.mxu1 %vm34_vm0, %v2935_v20  ;;  %2467 = vmatprep.subr.mxu0 %v2773_v0 }
  0x24   :  { %2486 = vmatprep.subr.mxu1 %v2773_v0  ;;  %2481 = vmatprep.mubr.msk.f32.mxu0 %vm2774_vm1, %v2773_v0 }
  0x25   :  { %2500 = vmatprep.mubr.msk.f32.mxu1 %vm2774_vm1, %v2773_v0 }
  0x26   :  { %2468 = vmatpush3.xpose.msk.msra.mxu0 %vm34_vm0, %v2948_v21 }
  0x27   :  { %2487 = vmatpush3.xpose.msk.msra.mxu1 %vm34_vm0, %v2806_v2  ;;  %2469 = vmatprep.subr.mxu0 %v2773_v0 }
  0x28   :  { %2488 = vmatprep.subr.mxu1 %v2773_v0 }
  0x2a   :  { %2470 = vmatpush3.xpose.msk.msra.mxu0 %vm34_vm0, %v2963_v22 }
  0x2b   :  { %2489 = vmatpush3.xpose.msk.msra.mxu1 %vm34_vm0, %v2822_v4  ;;  %2471 = vmatprep.subr.mxu0 %v2773_v0 }
  0x2c   :  { %2490 = vmatprep.subr.mxu1 %v2773_v0 }
  0x2e   :  { %2472 = vmatpush3.xpose.msk.msra.mxu0 %vm34_vm0, %v2974_v23 }
  0x2f   :  { %2491 = vmatpush3.xpose.msk.msra.mxu1 %vm34_vm0, %v2842_v6  ;;  %2473 = vmatprep.subr.mxu0 %v2773_v0 }
  0x30   :  { %2492 = vmatprep.subr.mxu1 %v2773_v0 }
  0x32   :  { %2474 = vmatpush3.xpose.msk.msra.mxu0 %vm34_vm0, %v2985_v24 }
  0x33   :  { %2493 = vmatpush3.xpose.msk.msra.mxu1 %vm34_vm0, %v2858_v8  ;;  %2475 = vmatprep.subr.mxu0 %v2773_v0 }
  0x34   :  { %2494 = vmatprep.subr.mxu1 %v2773_v0 }
  0x36   :  { %2476 = vmatpush3.xpose.msk.msra.mxu0 %vm34_vm0, %v2996_v25 }
  0x37   :  { %2495 = vmatpush3.xpose.msk.msra.mxu1 %vm34_vm0, %v2874_v10  ;;  %2477 = vmatprep.subr.mxu0 %v2773_v0 }
  0x38   :  { %2496 = vmatprep.subr.mxu1 %v2773_v0 }
  0x3a   :  { %2478 = vmatpush3.xpose.msk.msra.mxu0 %vm34_vm0, %v230_v26 }
  0x3b   :  { %2497 = vmatpush3.xpose.msk.msra.mxu1 %vm34_vm0, %v2890_v12  ;;  %2479 = vmatprep.subr.mxu0 %v2773_v0 }
  0x3c   :  { %2498 = vmatprep.subr.mxu1 %v2773_v0 }
  0x3e   :  { %2480 = vmatpush3.xpose.msk.msra.mxu0 %vm34_vm0, %v229_v27  ;;  %v2236_v27 = vld [vmem:[%s3588_s1 + $0x1c] sm:$0xf] }
  0x3f   :  { %2499 = vmatpush3.xpose.msk.msra.mxu1 %vm34_vm0, %v16_v14  ;;  %2503 = vmatprep.subr.mxu0 %v2773_v0 }
  0x40   :  { %2522 = vmatprep.subr.mxu1 %v2773_v0 }
  0x41   :  { %2482 = vmatmul.mubr.msk.f32.vlgmr.msra.gmra.mxu0 %vm34_vm0, %v1985_v28  ;;  %v2254_v28 = vld [vmem:[%s3588_s1 + $0x20] sm:$0xf] }
  0x42   :  { %2501 = vmatmul.mubr.msk.f32.vlgmr.msra.gmra.mxu1 %vm34_vm0, %v2003_v29  ;;  %2504 = vmatpush3.xpose.msk.msra.mxu0 %vm34_vm0, %v2020_v30 }
  0x43   :  { %2523 = vmatpush3.xpose.msk.msra.mxu1 %vm34_vm0, %v3031_v31  ;;  %2505 = vmatprep.subr.mxu0 %v2773_v0 }
  0x44   :  { %2524 = vmatprep.subr.mxu1 %v2773_v0  ;;  %2519 = vmatprep.mubr.msk.f32.mxu0 %vm2774_vm1, %v2773_v0 }
  0x45   :  { %2538 = vmatprep.mubr.msk.f32.mxu1 %vm2774_vm1, %v2773_v0 }
  0x46   :  { %2506 = vmatpush3.xpose.msk.msra.mxu0 %vm34_vm0, %v2801_v1 }
  0x47   :  { %2525 = vmatpush3.xpose.msk.msra.mxu1 %vm34_vm0, %v2930_v19  ;;  %2507 = vmatprep.subr.mxu0 %v2773_v0 }
  0x48   :  { %2526 = vmatprep.subr.mxu1 %v2773_v0 }
  0x4a   :  { %2508 = vmatpush3.xpose.msk.msra.mxu0 %vm34_vm0, %v2817_v3 }
  0x4b   :  { %2527 = vmatpush3.xpose.msk.msra.mxu1 %vm34_vm0, %v2948_v21  ;;  %2509 = vmatprep.subr.mxu0 %v2773_v0 }
  0x4c   :  { %2528 = vmatprep.subr.mxu1 %v2773_v0 }
  0x4e   :  { %2510 = vmatpush3.xpose.msk.msra.mxu0 %vm34_vm0, %v2837_v5 }
  0x4f   :  { %2529 = vmatpush3.xpose.msk.msra.mxu1 %vm34_vm0, %v2963_v22  ;;  %2511 = vmatprep.subr.mxu0 %v2773_v0 }
  0x50   :  { %2530 = vmatprep.subr.mxu1 %v2773_v0 }
  0x52   :  { %2512 = vmatpush3.xpose.msk.msra.mxu0 %vm34_vm0, %v2853_v7 }
  0x53   :  { %2531 = vmatpush3.xpose.msk.msra.mxu1 %vm34_vm0, %v2974_v23  ;;  %2513 = vmatprep.subr.mxu0 %v2773_v0 }
  0x54   :  { %2532 = vmatprep.subr.mxu1 %v2773_v0 }
  0x56   :  { %2514 = vmatpush3.xpose.msk.msra.mxu0 %vm34_vm0, %v2869_v9 }
  0x57   :  { %2533 = vmatpush3.xpose.msk.msra.mxu1 %vm34_vm0, %v2985_v24  ;;  %2515 = vmatprep.subr.mxu0 %v2773_v0 }
  0x58   :  { %2534 = vmatprep.subr.mxu1 %v2773_v0 }
  0x5a   :  { %2516 = vmatpush3.xpose.msk.msra.mxu0 %vm34_vm0, %v2885_v11 }
  0x5b   :  { %2535 = vmatpush3.xpose.msk.msra.mxu1 %vm34_vm0, %v2996_v25  ;;  %2517 = vmatprep.subr.mxu0 %v2773_v0 }
  0x5c   :  { %2536 = vmatprep.subr.mxu1 %v2773_v0 }
  0x5e   :  { %2518 = vmatpush3.xpose.msk.msra.mxu0 %vm34_vm0, %v2901_v13 }
  0x5f   :  { %2537 = vmatpush3.xpose.msk.msra.mxu1 %vm34_vm0, %v230_v26  ;;  %2541 = vmatprep.subr.mxu0 %v2773_v0 }
  0x60   :  { %2560 = vmatprep.subr.mxu1 %v2773_v0 }
  0x61   :  { %2520 = vmatmul.mubr.msk.f32.vlgmr.msra.gmra.mxu0 %vm34_vm0, %v2021_v32 }
  0x62   :  { %2539 = vmatmul.mubr.msk.f32.vlgmr.msra.gmra.mxu1 %vm34_vm0, %v2039_v33  ;;  %2542 = vmatpush3.xpose.msk.msra.mxu0 %vm34_vm0, %v2056_v34 }
  0x63   :  { %2561 = vmatpush3.xpose.msk.msra.mxu1 %vm34_vm0, %v2074_v35  ;;  %2543 = vmatprep.subr.mxu0 %v2773_v0 }
  0x64   :  { %2562 = vmatprep.subr.mxu1 %v2773_v0  ;;  %2557 = vmatprep.mubr.msk.f32.mxu0 %vm2774_vm1, %v2773_v0 }
  0x65   :  { %2576 = vmatprep.mubr.msk.f32.mxu1 %vm2774_vm1, %v2773_v0 }
  0x66   :  { %2544 = vmatpush3.xpose.msk.msra.mxu0 %vm34_vm0, %v2935_v20  ;;  %v2253_v20 = vld [vmem:[%s3587_s0 + $0x132] sm:$0xff] }
  0x67   :  { %2563 = vmatpush3.xpose.msk.msra.mxu1 %vm34_vm0, %v2020_v30  ;;  %2545 = vmatprep.subr.mxu0 %v2773_v0 }
  0x68   :  { %2564 = vmatprep.subr.mxu1 %v2773_v0 }
  0x6a   :  { %2546 = vmatpush3.xpose.msk.msra.mxu0 %vm34_vm0, %v2806_v2  ;;  %v2103_v2 = vld [vmem:[%s3587_s0 + $0xa0] sm:$0xff] }
  0x6b   :  { %2565 = vmatpush3.xpose.msk.msra.mxu1 %vm34_vm0, %v2801_v1  ;;  %2547 = vmatprep.subr.mxu0 %v2773_v0  ;;  %v3364_v1 = vld [vmem:[%s3587_s0 + $0xb2] sm:$0xff] }
  0x6c   :  { %2566 = vmatprep.subr.mxu1 %v2773_v0 }
  0x6e   :  { %2548 = vmatpush3.xpose.msk.msra.mxu0 %vm34_vm0, %v2822_v4  ;;  %v1004_v4 = vld [vmem:[%s3588_s1] sm:$0xf] }
  0x6f   :  { %2567 = vmatpush3.xpose.msk.msra.mxu1 %vm34_vm0, %v2817_v3  ;;  %2549 = vmatprep.subr.mxu0 %v2773_v0  ;;  %v2138_v3 = vld [vmem:[%s3587_s0 + $0xa2] sm:$0xff] }
  0x70   :  { %2568 = vmatprep.subr.mxu1 %v2773_v0 }
  0x72   :  { %2550 = vmatpush3.xpose.msk.msra.mxu0 %vm34_vm0, %v2842_v6  ;;  %v2163_v6 = vld [vmem:[%s3587_s0 + $0x120] sm:$0xff] }
  0x73   :  { %2569 = vmatpush3.xpose.msk.msra.mxu1 %vm34_vm0, %v2837_v5  ;;  %2551 = vmatprep.subr.mxu0 %v2773_v0  ;;  %v2146_v5 = vld [vmem:[%s3588_s1 + $0x8] sm:$0xf] }
  0x74   :  { %2570 = vmatprep.subr.mxu1 %v2773_v0 }
  0x76   :  { %2552 = vmatpush3.xpose.msk.msra.mxu0 %vm34_vm0, %v2858_v8  ;;  %v2164_v8 = vld [vmem:[%s3588_s1 + $0xc] sm:$0xf] }
  0x77   :  { %2571 = vmatpush3.xpose.msk.msra.mxu1 %vm34_vm0, %v2853_v7  ;;  %2553 = vmatprep.subr.mxu0 %v2773_v0  ;;  %v3393_v7 = vld [vmem:[%s3587_s0 + $0x121] sm:$0xff] }
  0x78   :  { %2572 = vmatprep.subr.mxu1 %v2773_v0 }
  0x7a   :  { %2554 = vmatpush3.xpose.msk.msra.mxu0 %vm34_vm0, %v2874_v10  ;;  %v2199_v10 = vld [vmem:[%s3587_s0 + $0x122] sm:$0xff] }
  0x7b   :  { %2573 = vmatpush3.xpose.msk.msra.mxu1 %vm34_vm0, %v2869_v9  ;;  %2555 = vmatprep.subr.mxu0 %v2773_v0  ;;  %v2182_v9 = vld [vmem:[%s3588_s1 + $0x10] sm:$0xf] }
  0x7c   :  { %2574 = vmatprep.subr.mxu1 %v2773_v0 }
  0x7e   :  { %2556 = vmatpush3.xpose.msk.msra.mxu0 %vm34_vm0, %v2890_v12 }
  0x7f   :  { %2575 = vmatpush3.xpose.msk.msra.mxu1 %vm34_vm0, %v2885_v11  ;;  %2579 = vmatprep.subr.mxu0 %v2773_v0  ;;  %v2217_v11 = vld [vmem:[%s3587_s0 + $0x130] sm:$0xff] }
  0x80   :  { %2598 = vmatprep.subr.mxu1 %v2773_v0 }
  0x81   :  { %2558 = vmatmul.mubr.msk.f32.vlgmr.msra.gmra.mxu0 %vm34_vm0, %v2057_v38 }
  0x82   :  { %2577 = vmatmul.mubr.msk.f32.vlgmr.msra.gmra.mxu1 %vm34_vm0, %v2075_v39  ;;  %2580 = vmatpush3.xpose.msk.msra.mxu0 %vm34_vm0, %v2092_v40 }
  0x83   :  { %2599 = vmatpush3.xpose.msk.msra.mxu1 %vm34_vm0, %v3163_v41  ;;  %2581 = vmatprep.subr.mxu0 %v2773_v0 }
  0x84   :  { %2600 = vmatprep.subr.mxu1 %v2773_v0  ;;  %2595 = vmatprep.mubr.msk.f32.mxu0 %vm2774_vm1, %v2773_v0 }
  0x85   :  { %2614 = vmatprep.mubr.msk.f32.mxu1 %vm2774_vm1, %v2773_v0 }
  0x86   :  { %2582 = vmatpush3.xpose.msk.msra.mxu0 %vm34_vm0, %v3031_v31 }
  0x87   :  { %2601 = vmatpush3.xpose.msk.msra.mxu1 %vm34_vm0, %v3175_v42  ;;  %2583 = vmatprep.subr.mxu0 %v2773_v0 }
  0x88   :  { %2602 = vmatprep.subr.mxu1 %v2773_v0 }
  0x8a   :  { %2584 = vmatpush3.xpose.msk.msra.mxu0 %vm34_vm0, %v2930_v19  ;;  %v2235_v19 = vld [vmem:[%s3587_s0 + $0x131] sm:$0xff] }
  0x8b   :  { %2603 = vmatpush3.xpose.msk.msra.mxu1 %vm34_vm0, %v3190_v43  ;;  %2585 = vmatprep.subr.mxu0 %v2773_v0 }
  0x8c   :  { %2604 = vmatprep.subr.mxu1 %v2773_v0 }
  0x8d   :  { %v990_v40 = vpop.permute.xlu0 %989 }
  0x8e   :  { %2586 = vmatpush3.xpose.msk.msra.mxu0 %vm34_vm0, %v2948_v21 }
  0x8f   :  { %2605 = vmatpush3.xpose.msk.msra.mxu1 %vm34_vm0, %v3201_v44  ;;  %2587 = vmatprep.subr.mxu0 %v2773_v0 }
  0x90   :  { %2606 = vmatprep.subr.mxu1 %v2773_v0 }
  0x92   :  { %2588 = vmatpush3.xpose.msk.msra.mxu0 %vm34_vm0, %v2963_v22 }
  0x93   :  { %2607 = vmatpush3.xpose.msk.msra.mxu1 %vm34_vm0, %v3212_v45  ;;  %2589 = vmatprep.subr.mxu0 %v2773_v0 }
  0x94   :  { %2608 = vmatprep.subr.mxu1 %v2773_v0 }
  0x96   :  { %2590 = vmatpush3.xpose.msk.msra.mxu0 %vm34_vm0, %v2974_v23 }
  0x97   :  { %2609 = vmatpush3.xpose.msk.msra.mxu1 %vm34_vm0, %v3223_v46  ;;  %2591 = vmatprep.subr.mxu0 %v2773_v0 }
  0x98   :  { %2610 = vmatprep.subr.mxu1 %v2773_v0 }
  0x9a   :  { %2592 = vmatpush3.xpose.msk.msra.mxu0 %vm34_vm0, %v2985_v24 }
  0x9b   :  { %2611 = vmatpush3.xpose.msk.msra.mxu1 %vm34_vm0, %v3234_v47  ;;  %2593 = vmatprep.subr.mxu0 %v2773_v0 }
  0x9c   :  { %2612 = vmatprep.subr.mxu1 %v2773_v0 }
  0x9e   :  { %2594 = vmatpush3.xpose.msk.msra.mxu0 %vm34_vm0, %v2996_v25 }
  0x9f   :  { %2613 = vmatpush3.xpose.msk.msra.mxu1 %vm34_vm0, %v2111_v48  ;;  %2617 = vmatprep.subr.mxu0 %v2773_v0 }
  0xa0   :  { %2636 = vmatprep.subr.mxu1 %v2773_v0 }
  0xa1   :  { %2596 = vmatmul.mubr.msk.f32.vlgmr.msra.gmra.mxu0 %vm34_vm0, %v2093_v49 }
  0xa2   :  { %2615 = vmatmul.mubr.msk.f32.vlgmr.msra.gmra.mxu1 %vm34_vm0, %v2119_v50  ;;  %2618 = vmatpush3.xpose.msk.msra.mxu0 %vm34_vm0, %v3259_v51 }
  0xa3   :  { %2637 = vmatpush3.xpose.msk.msra.mxu1 %vm34_vm0, %v3264_v52  ;;  %2619 = vmatprep.subr.mxu0 %v2773_v0 }
  0xa4   :  { %2638 = vmatprep.subr.mxu1 %v2773_v0  ;;  %2633 = vmatprep.mubr.msk.f32.mxu0 %vm2774_vm1, %v2773_v0 }
  0xa5   :  { %2652 = vmatprep.mubr.msk.f32.mxu1 %vm2774_vm1, %v2773_v0 }
  0xa6   :  { %2620 = vmatpush3.xpose.msk.msra.mxu0 %vm34_vm0, %v3277_v53 }
  0xa7   :  { %2639 = vmatpush3.xpose.msk.msra.mxu1 %vm34_vm0, %v3282_v54  ;;  %2621 = vmatprep.subr.mxu0 %v2773_v0 }
  0xa8   :  { %2640 = vmatprep.subr.mxu1 %v2773_v0 }
  0xaa   :  { %2622 = vmatpush3.xpose.msk.msra.mxu0 %vm34_vm0, %v3297_v55 }
  0xab   :  { %2641 = vmatpush3.xpose.msk.msra.mxu1 %vm34_vm0, %v3302_v56  ;;  %2623 = vmatprep.subr.mxu0 %v2773_v0 }
  0xac   :  { %2642 = vmatprep.subr.mxu1 %v2773_v0 }
  0xae   :  { %2624 = vmatpush3.xpose.msk.msra.mxu0 %vm34_vm0, %v3313_v57 }
  0xaf   :  { %2643 = vmatpush3.xpose.msk.msra.mxu1 %vm34_vm0, %v3318_v58  ;;  %2625 = vmatprep.subr.mxu0 %v2773_v0 }
  0xb0   :  { %2644 = vmatprep.subr.mxu1 %v2773_v0 }
  0xb2   :  { %2626 = vmatpush3.xpose.msk.msra.mxu0 %vm34_vm0, %v3329_v59 }
  0xb3   :  { %2645 = vmatpush3.xpose.msk.msra.mxu1 %vm34_vm0, %v3334_v60  ;;  %2627 = vmatprep.subr.mxu0 %v2773_v0 }
  0xb4   :  { %2646 = vmatprep.subr.mxu1 %v2773_v0 }
  0xb6   :  { %2628 = vmatpush3.xpose.msk.msra.mxu0 %vm34_vm0, %v3345_v61 }
  0xb7   :  { %2647 = vmatpush3.xpose.msk.msra.mxu1 %vm34_vm0, %v3350_v62  ;;  %2629 = vmatprep.subr.mxu0 %v2773_v0 }
  0xb8   :  { %2648 = vmatprep.subr.mxu1 %v2773_v0 }
  0xba   :  { %2630 = vmatpush3.xpose.msk.msra.mxu0 %vm34_vm0, %v2104_v63 }
  0xbb   :  { %2649 = vmatpush3.xpose.msk.msra.mxu1 %vm34_vm0, %v3364_v1  ;;  %2631 = vmatprep.subr.mxu0 %v2773_v0 }
  0xbc   :  { %2650 = vmatprep.subr.mxu1 %v2773_v0 }
  0xbe   :  { %2632 = vmatpush3.xpose.msk.msra.mxu0 %vm34_vm0, %v2103_v2 }
  0xbf   :  { %2651 = vmatpush3.xpose.msk.msra.mxu1 %vm34_vm0, %v2138_v3  ;;  %2655 = vmatprep.subr.mxu0 %v2773_v0 }
  0xc0   :  { %2674 = vmatprep.subr.mxu1 %v2773_v0 }
  0xc1   :  { %2634 = vmatmul.mubr.msk.f32.vlgmr.msra.gmra.mxu0 %vm34_vm0, %v1004_v4 }
  0xc2   :  { %2653 = vmatmul.mubr.msk.f32.vlgmr.msra.gmra.mxu1 %vm34_vm0, %v2146_v5  ;;  %2656 = vmatpush3.xpose.msk.msra.mxu0 %vm34_vm0, %v2163_v6 }
  0xc3   :  { %2675 = vmatpush3.xpose.msk.msra.mxu1 %vm34_vm0, %v3393_v7  ;;  %2657 = vmatprep.subr.mxu0 %v2773_v0 }
  0xc4   :  { %2676 = vmatprep.subr.mxu1 %v2773_v0  ;;  %2671 = vmatprep.mubr.msk.f32.mxu0 %vm2774_vm1, %v2773_v0 }
  0xc5   :  { %2690 = vmatprep.mubr.msk.f32.mxu1 %vm2774_vm1, %v2773_v0 }
  0xc6   :  { %2658 = vmatpush3.xpose.msk.msra.mxu0 %vm34_vm0, %v3259_v51 }
  0xc7   :  { %2677 = vmatpush3.xpose.msk.msra.mxu1 %vm34_vm0, %v3163_v41  ;;  %2659 = vmatprep.subr.mxu0 %v2773_v0 }
  0xc8   :  { %2678 = vmatprep.subr.mxu1 %v2773_v0 }
  0xca   :  { %2660 = vmatpush3.xpose.msk.msra.mxu0 %vm34_vm0, %v3277_v53 }
  0xcb   :  { %2679 = vmatpush3.xpose.msk.msra.mxu1 %vm34_vm0, %v3175_v42  ;;  %2661 = vmatprep.subr.mxu0 %v2773_v0 }
  0xcc   :  { %2680 = vmatprep.subr.mxu1 %v2773_v0 }
  0xce   :  { %2662 = vmatpush3.xpose.msk.msra.mxu0 %vm34_vm0, %v3297_v55 }
  0xcf   :  { %2681 = vmatpush3.xpose.msk.msra.mxu1 %vm34_vm0, %v3190_v43  ;;  %2663 = vmatprep.subr.mxu0 %v2773_v0 }
  0xd0   :  { %2682 = vmatprep.subr.mxu1 %v2773_v0 }
  0xd2   :  { %2664 = vmatpush3.xpose.msk.msra.mxu0 %vm34_vm0, %v3313_v57 }
  0xd3   :  { %2683 = vmatpush3.xpose.msk.msra.mxu1 %vm34_vm0, %v3201_v44  ;;  %2665 = vmatprep.subr.mxu0 %v2773_v0 }
  0xd4   :  { %2684 = vmatprep.subr.mxu1 %v2773_v0 }
  0xd6   :  { %2666 = vmatpush3.xpose.msk.msra.mxu0 %vm34_vm0, %v3329_v59 }
  0xd7   :  { %2685 = vmatpush3.xpose.msk.msra.mxu1 %vm34_vm0, %v3212_v45  ;;  %2667 = vmatprep.subr.mxu0 %v2773_v0 }
  0xd8   :  { %2686 = vmatprep.subr.mxu1 %v2773_v0 }
  0xda   :  { %2668 = vmatpush3.xpose.msk.msra.mxu0 %vm34_vm0, %v3345_v61 }
  0xdb   :  { %2687 = vmatpush3.xpose.msk.msra.mxu1 %vm34_vm0, %v3223_v46  ;;  %2669 = vmatprep.subr.mxu0 %v2773_v0 }
  0xdc   :  { %2688 = vmatprep.subr.mxu1 %v2773_v0 }
  0xde   :  { %2670 = vmatpush3.xpose.msk.msra.mxu0 %vm34_vm0, %v2104_v63 }
  0xdf   :  { %2689 = vmatpush3.xpose.msk.msra.mxu1 %vm34_vm0, %v3234_v47  ;;  %2693 = vmatprep.subr.mxu0 %v2773_v0 }
  0xe0   :  { %2712 = vmatprep.subr.mxu1 %v2773_v0 }
  0xe1   :  { %v128_v12 = vpop.f32.mrf.mxu0  ;;  %2672 = vmatmul.mubr.msk.f32.vlgmr.msra.gmra.mxu0 %vm34_vm0, %v2164_v8 }
  0xe2   :  { %v225_v13 = vpop.f32.mrf.mxu1  ;;  %2691 = vmatmul.mubr.msk.f32.vlgmr.msra.gmra.mxu1 %vm34_vm0, %v2182_v9  ;;  %2694 = vmatpush3.xpose.msk.msra.mxu0 %vm34_vm0, %v2199_v10 }
  0xe3   :  { %v226_v14 = vadd.f32 %v225_v13, %v128_v12  ;;  %2713 = vmatpush3.xpose.msk.msra.mxu1 %vm34_vm0, %v2217_v11  ;;  %v2445_v15 = vpop.f32.mrf.mxu0  ;;  %2695 = vmatprep.subr.mxu0 %v2773_v0 }
  0xe4   :  { %v2464_v16 = vpop.f32.mrf.mxu1  ;;  %2714 = vmatprep.subr.mxu1 %v2773_v0  ;;  %2709 = vmatprep.mubr.msk.f32.mxu0 %vm2774_vm1, %v2773_v0 }
  0xe5   :  { %2728 = vmatprep.mubr.msk.f32.mxu1 %vm2774_vm1, %v2773_v0 }
  0xe6   :  { %2696 = vmatpush3.xpose.msk.msra.mxu0 %vm34_vm0, %v3264_v52 }
  0xe7   :  { %2715 = vmatpush3.xpose.msk.msra.mxu1 %vm34_vm0, %v2163_v6  ;;  %2697 = vmatprep.subr.mxu0 %v2773_v0 }
  0xe8   :  { %2716 = vmatprep.subr.mxu1 %v2773_v0 }
  0xea   :  { %2698 = vmatpush3.xpose.msk.msra.mxu0 %vm34_vm0, %v3282_v54 }
  0xeb   :  { %2717 = vmatpush3.xpose.msk.msra.mxu1 %vm34_vm0, %v3259_v51  ;;  %2699 = vmatprep.subr.mxu0 %v2773_v0 }
  0xec   :  { %2718 = vmatprep.subr.mxu1 %v2773_v0 }
  0xee   :  { %2700 = vmatpush3.xpose.msk.msra.mxu0 %vm34_vm0, %v3302_v56 }
  0xef   :  { %2719 = vmatpush3.xpose.msk.msra.mxu1 %vm34_vm0, %v3277_v53  ;;  %2701 = vmatprep.subr.mxu0 %v2773_v0 }
  0xf0   :  { %2720 = vmatprep.subr.mxu1 %v2773_v0 }
  0xf2   :  { %2702 = vmatpush3.xpose.msk.msra.mxu0 %vm34_vm0, %v3318_v58 }
  0xf3   :  { %2721 = vmatpush3.xpose.msk.msra.mxu1 %vm34_vm0, %v3297_v55  ;;  %2703 = vmatprep.subr.mxu0 %v2773_v0 }
  0xf4   :  { %2722 = vmatprep.subr.mxu1 %v2773_v0 }
  0xf6   :  { %2704 = vmatpush3.xpose.msk.msra.mxu0 %vm34_vm0, %v3334_v60 }
  0xf7   :  { %2723 = vmatpush3.xpose.msk.msra.mxu1 %vm34_vm0, %v3313_v57  ;;  %2705 = vmatprep.subr.mxu0 %v2773_v0 }
  0xf8   :  { %2724 = vmatprep.subr.mxu1 %v2773_v0 }
  0xfa   :  { %2706 = vmatpush3.xpose.msk.msra.mxu0 %vm34_vm0, %v3350_v62 }
  0xfb   :  { %2725 = vmatpush3.xpose.msk.msra.mxu1 %vm34_vm0, %v3329_v59  ;;  %2707 = vmatprep.subr.mxu0 %v2773_v0 }
  0xfc   :  { %2726 = vmatprep.subr.mxu1 %v2773_v0 }
  0xfe   :  { %2708 = vmatpush3.xpose.msk.msra.mxu0 %vm34_vm0, %v3364_v1 }
  0xff   :  { %2727 = vmatpush3.xpose.msk.msra.mxu1 %vm34_vm0, %v3345_v61  ;;  %2731 = vmatprep.subr.mxu0 %v2773_v0 }
 0x100   :  { %2750 = vmatprep.subr.mxu1 %v2773_v0 }
 0x101   :  { %v332_v21 = vpop.f32.mrf.mxu0  ;;  %2710 = vmatmul.mubr.msk.f32.vlgmr.msra.gmra.mxu0 %vm34_vm0, %v2200_v17 }
 0x102   :  { %v441_v22 = vpop.f32.mrf.mxu1  ;;  %2729 = vmatmul.mubr.msk.f32.vlgmr.msra.gmra.mxu1 %vm34_vm0, %v2218_v18  ;;  %v336_v23 = vadd.f32 %v332_v21, %v226_v14  ;;  %2732 = vmatpush3.xpose.msk.msra.mxu0 %vm34_vm0, %v2235_v19 }
 0x103   :  { %2751 = vmatpush3.xpose.msk.msra.mxu1 %vm34_vm0, %v2253_v20  ;;  %v2483_v24 = vpop.f32.mrf.mxu0  ;;  %2733 = vmatprep.subr.mxu0 %v2773_v0 }
 0x104   :  { %v2502_v25 = vpop.f32.mrf.mxu1  ;;  %2752 = vmatprep.subr.mxu1 %v2773_v0  ;;  %v445_v26 = vadd.f32 %v441_v22, %v336_v23  ;;  %2747 = vmatprep.mubr.msk.f32.mxu0 %vm2774_vm1, %v2773_v0 }
 0x105   :  { %2766 = vmatprep.mubr.msk.f32.mxu1 %vm2774_vm1, %v2773_v0 }
 0x106   :  { %2734 = vmatpush3.xpose.msk.msra.mxu0 %vm34_vm0, %v3393_v7 }
 0x107   :  { %2753 = vmatpush3.xpose.msk.msra.mxu1 %vm34_vm0, %v2199_v10  ;;  %2735 = vmatprep.subr.mxu0 %v2773_v0 }
 0x108   :  { %2754 = vmatprep.subr.mxu1 %v2773_v0 }
 0x10a   :  { %2736 = vmatpush3.xpose.msk.msra.mxu0 %vm34_vm0, %v3163_v41 }
 0x10b   :  { %2755 = vmatpush3.xpose.msk.msra.mxu1 %vm34_vm0, %v3264_v52  ;;  %2737 = vmatprep.subr.mxu0 %v2773_v0 }
 0x10c   :  { %2756 = vmatprep.subr.mxu1 %v2773_v0 }
 0x10e   :  { %2738 = vmatpush3.xpose.msk.msra.mxu0 %vm34_vm0, %v3175_v42 }
 0x10f   :  { %2757 = vmatpush3.xpose.msk.msra.mxu1 %vm34_vm0, %v3282_v54  ;;  %2739 = vmatprep.subr.mxu0 %v2773_v0 }
 0x110   :  { %2758 = vmatprep.subr.mxu1 %v2773_v0 }
 0x112   :  { %2740 = vmatpush3.xpose.msk.msra.mxu0 %vm34_vm0, %v3190_v43 }
 0x113   :  { %2759 = vmatpush3.xpose.msk.msra.mxu1 %vm34_vm0, %v3302_v56  ;;  %2741 = vmatprep.subr.mxu0 %v2773_v0 }
 0x114   :  { %2760 = vmatprep.subr.mxu1 %v2773_v0 }
 0x116   :  { %2742 = vmatpush3.xpose.msk.msra.mxu0 %vm34_vm0, %v3201_v44 }
 0x117   :  { %2761 = vmatpush3.xpose.msk.msra.mxu1 %vm34_vm0, %v3318_v58  ;;  %2743 = vmatprep.subr.mxu0 %v2773_v0 }
 0x118   :  { %2762 = vmatprep.subr.mxu1 %v2773_v0 }
 0x11a   :  { %2744 = vmatpush3.xpose.msk.msra.mxu0 %vm34_vm0, %v3212_v45 }
 0x11b   :  { %2763 = vmatpush3.xpose.msk.msra.mxu1 %vm34_vm0, %v3334_v60  ;;  %2745 = vmatprep.subr.mxu0 %v2773_v0 }
 0x11c   :  { %2764 = vmatprep.subr.mxu1 %v2773_v0 }
 0x11e   :  { %2746 = vmatpush3.xpose.msk.msra.mxu0 %vm34_vm0, %v3223_v46 }
 0x11f   :  { %2765 = vmatpush3.xpose.msk.msra.mxu1 %vm34_vm0, %v3350_v62 }
 0x121   :  { %v549_v29 = vpop.f32.mrf.mxu0  ;;  %2748 = vmatmul.mubr.msk.f32.vlgmr.msra.gmra.mxu0 %vm34_vm0, %v2236_v27 }
 0x122   :  { %2767 = vmatmul.mubr.msk.f32.vlgmr.msra.gmra.mxu1 %vm34_vm0, %v2254_v28  ;;  %v657_v0 = vpop.f32.mrf.mxu1  ;;  %v553_v36 = vadd.f32 %v549_v29, %v445_v26 }
 0x123   :  { %v2521_v30 = vpop.f32.mrf.mxu0 }
 0x124   :  { %v2540_v31 = vpop.f32.mrf.mxu1  ;;  %v661_v37 = vadd.f32 %v657_v0, %v553_v36 }
 0x141   :  { %v766_v32 = vpop.f32.mrf.mxu0 }
 0x142   :  { %v874_v33 = vpop.f32.mrf.mxu1  ;;  %v770_v38 = vadd.f32 %v766_v32, %v661_v37 }
 0x143   :  { %v2559_v34 = vpop.f32.mrf.mxu0 }
 0x144   :  { %v2578_v35 = vpop.f32.mrf.mxu1  ;;  %v878_v39 = vadd.f32 %v874_v33, %v770_v38 }
 0x161   :  { %v982_v41 = vpop.f32.mrf.mxu0 }
 0x162   :  { %v1107_v42 = vpop.f32.mrf.mxu1  ;;  %v986_v43 = vadd.f32 %v982_v41, %v878_v39 }
 0x163   :  { %v2597_v44 = vpop.f32.mrf.mxu0 }
 0x164   :  { %v2616_v45 = vpop.f32.mrf.mxu1  ;;  %v992_v46 = vadd.f32 %v990_v40, %v986_v43 }
 0x166   :  { %994 = vst.msk [vmem:[%s3590_s3] sm:$0xf] %vm993_vm2, %v992_v46 }
 0x181   :  { %v1204_v47 = vpop.f32.mrf.mxu0 }
 0x182   :  { %v1310_v48 = vpop.f32.mrf.mxu1  ;;  %v1205_v49 = vadd.f32 %v1204_v47, %v1107_v42 }
 0x183   :  { %v2635_v50 = vpop.f32.mrf.mxu0 }
 0x184   :  { %v2654_v51 = vpop.f32.mrf.mxu1  ;;  %v1314_v52 = vadd.f32 %v1310_v48, %v1205_v49 }
 0x1a1   :  { %v1418_v53 = vpop.f32.mrf.mxu0 }
 0x1a2   :  { %v1525_v54 = vpop.f32.mrf.mxu1  ;;  %v1422_v61 = vadd.f32 %v1418_v53, %v1314_v52 }
 0x1a3   :  { %v2673_v55 = vpop.f32.mrf.mxu0 }
 0x1a4   :  { %v2692_v56 = vpop.f32.mrf.mxu1  ;;  %v1529_v62 = vadd.f32 %v1525_v54, %v1422_v61 }
 0x1c1   :  { %v1632_v57 = vpop.f32.mrf.mxu0 }
 0x1c2   :  { %v1740_v58 = vpop.f32.mrf.mxu1  ;;  %v1636_v63 = vadd.f32 %v1632_v57, %v1529_v62 }
 0x1c3   :  { %v2711_v59 = vpop.f32.mrf.mxu0 }
 0x1c4   :  { %v2730_v60 = vpop.f32.mrf.mxu1  ;;  %v1744_v1 = vadd.f32 %v1740_v58, %v1636_v63 }
 0x1e1   :  { %v1847_v2 = vpop.f32.mrf.mxu0 }
 0x1e2   :  { %v1954_v3 = vpop.f32.mrf.mxu1  ;;  %v1851_v4 = vadd.f32 %v1847_v2, %v1744_v1 }
 0x1e3   :  { %v2749_v5 = vpop.f32.mrf.mxu0 }
 0x1e4   :  { %v2768_v6 = vpop.f32.mrf.mxu1  ;;  %v1958_v7 = vadd.f32 %v1954_v3, %v1851_v4 }
 0x1e6   :  { %v1959_v8 = vadd.f32 %v1958_v7, %v990_v40 }
 0x1e8   :  { %2264 = vst.msk [vmem:[%s3590_s3 + $0x4] sm:$0xf] %vm993_vm2, %v1959_v8 }

</bundles_post_ra>
